<compile_context>
chip_gen: v6e
topology: v6e:2x2x1
jax: 0.10.0
libtpu: 0.0.40
codegen_flags: <defaults>
</compile_context>

<pallas_src>
import functools

import jax
import jax.numpy as jnp
from jax.experimental import pallas as pl
from jax.experimental.pallas import tpu as pltpu

MARGIN = 1.0     # nn.TripletMarginLoss(margin=...)
NORM_P = 2       # nn.TripletMarginLoss(p=...) -- Euclidean norm implemented below
EPS = 1e-6       # torch.pairwise_distance default eps (added to the difference)

_BIG = 3.0e38    # finite +/- sentinel for masked max/min
_VMEM_LIMIT = 48 * 1024 * 1024   # safe on v5e/v6e (128 MiB) and v7x (64 MiB)


def _round_up(a, b):
    return (a + b - 1) // b * b


def _pick_tile(B, block_b):
    """Batch tile: multiple of 8; lane-aligned (128) whenever the grid is >1."""
    t = _round_up(min(block_b, B), 8)
    if t < _round_up(B, 8):          # more than one block along the batch axis
        t = _round_up(t, 128)        # keep (1, tile) row-vector blocks lane-dense
    return t


# ----------------------------------------------------------------------------
# Kernel 1: fused pairwise squared distances + batch-hard pos/neg mining.
#   grid = (Bp//tm, Bp//tn); j (candidate blocks) is the reduction axis.
# ----------------------------------------------------------------------------
def _miner_kernel(xi_ref, xj_ref, sqi_ref, sqj_ref, yi_ref, yj_ref,
                  pos_ref, neg_ref,
                  maxp_ref, minn_ref, amax_ref, amin_ref,
                  *, tm, tn, n_valid):
    i = pl.program_id(0)
    j = pl.program_id(1)

    @pl.when(j == 0)
    def _init():
        maxp_ref[...] = jnp.full_like(maxp_ref, -_BIG)
        minn_ref[...] = jnp.full_like(minn_ref, _BIG)
        amax_ref[...] = jnp.zeros_like(amax_ref)
        amin_ref[...] = jnp.zeros_like(amin_ref)

    # Gram tile on the MXU: bf16 operands, f32 accumulation, contraction over
    # the feature axis of both operands (never materializes x_j.T).
    gram = jax.lax.dot_general(
        xi_ref[...], xj_ref[...],
        dimension_numbers=(((1,), (1,)), ((), ())),
        preferred_element_type=jnp.float32)                       # (tm, tn) f32

    # ||x_i||^2 (tm,1) and ||x_j||^2 (1,tn) arrive pre-laid-out -> no transpose.
    d2 = jnp.maximum(sqi_ref[...] + sqj_ref[...] - 2.0 * gram, 0.0)

    row_g = i * tm + jax.lax.broadcasted_iota(jnp.int32, (tm, tn), 0)
    col_g = j * tn + jax.lax.broadcasted_iota(jnp.int32, (tm, tn), 1)
    same = yi_ref[...] == yj_ref[...]                              # (tm, tn) bool
    col_ok = col_g < n_valid                                       # drop padded cols
    pos_mask = same & (row_g != col_g) & col_ok
    neg_mask = jnp.logical_not(same) & col_ok

    col_f = col_g.astype(jnp.float32)                              # ids exact < 2^24

    # Hardest positive (max distance) in this j tile; first-occurrence ties.
    pos_score = jnp.where(pos_mask, d2, -_BIG)
    tile_max = jnp.max(pos_score, axis=1, keepdims=True)           # (tm, 1)
    tile_amax = jnp.min(jnp.where(pos_score == tile_max, col_f, _BIG),
                        axis=1, keepdims=True)                     # (tm, 1)
    better_p = tile_max > maxp_ref[...]
    amax_ref[...] = jnp.where(better_p, tile_amax, amax_ref[...])
    maxp_ref[...] = jnp.where(better_p, tile_max, maxp_ref[...])

    # Hardest negative (min distance) in this j tile.
    neg_score = jnp.where(neg_mask, d2, _BIG)
    tile_min = jnp.min(neg_score, axis=1, keepdims=True)
    tile_amin = jnp.min(jnp.where(neg_score == tile_min, col_f, _BIG),
                        axis=1, keepdims=True)
    better_n = tile_min < minn_ref[...]
    amin_ref[...] = jnp.where(better_n, tile_amin, amin_ref[...])
    minn_ref[...] = jnp.where(better_n, tile_min, minn_ref[...])

    @pl.when(j == pl.num_programs(1) - 1)
    def _finalize():
        pos_ref[...] = amax_ref[...].astype(jnp.int32)
        neg_ref[...] = amin_ref[...].astype(jnp.int32)


def batch_hard_mine(x_pad, y_pad, tile, n_valid):
    """Fused miner: returns (pos_idx, neg_idx) int32 (Bp,), no BxB HBM traffic."""
    Bp, Dp = x_pad.shape
    # Row norms precomputed once (O(B*D) glue); x fed as bf16 (halves DMA bytes,
    # MXU-native).  Norms stay f32 for accuracy.
    sq = jnp.sum(x_pad * x_pad, axis=1)                            # (Bp,) f32
    x_bf = x_pad.astype(jnp.bfloat16)

    kernel = functools.partial(_miner_kernel, tm=tile, tn=tile, n_valid=n_valid)
    grid = (Bp // tile, Bp // tile)
    pos_idx, neg_idx = pl.pallas_call(
        kernel,
        out_shape=(jax.ShapeDtypeStruct((Bp, 1), jnp.int32),
                   jax.ShapeDtypeStruct((Bp, 1), jnp.int32)),
        grid=grid,
        in_specs=[
            pl.BlockSpec((tile, Dp), lambda i, j: (i, 0)),   # anchor rows (bf16)
            pl.BlockSpec((tile, Dp), lambda i, j: (j, 0)),   # candidate rows (bf16)
            pl.BlockSpec((tile, 1), lambda i, j: (i, 0)),    # ||x_i||^2 column
            pl.BlockSpec((1, tile), lambda i, j: (0, j)),    # ||x_j||^2 row
            pl.BlockSpec((tile, 1), lambda i, j: (i, 0)),    # y_i column
            pl.BlockSpec((1, tile), lambda i, j: (0, j)),    # y_j row
        ],
        out_specs=[pl.BlockSpec((tile, 1), lambda i, j: (i, 0)),
                   pl.BlockSpec((tile, 1), lambda i, j: (i, 0))],
        scratch_shapes=[pltpu.VMEM((tile, 1), jnp.float32),  # running max d2(pos)
                        pltpu.VMEM((tile, 1), jnp.float32),  # running min d2(neg)
                        pltpu.VMEM((tile, 1), jnp.float32),  # running argmax
                        pltpu.VMEM((tile, 1), jnp.float32)], # running argmin
        compiler_params=pltpu.CompilerParams(
            dimension_semantics=("parallel", "arbitrary"),
            vmem_limit_bytes=_VMEM_LIMIT),
    )(x_bf, x_bf, sq[:, None], sq[None, :], y_pad[:, None], y_pad[None, :])
    return pos_idx[:, 0], neg_idx[:, 0]


# ----------------------------------------------------------------------------
# Kernel 2: nn.TripletMarginLoss(margin, p=2) forward, tiled over B with a
# resident (1,1) accumulator block (mean reduction applied at the last step).
# ----------------------------------------------------------------------------
def _loss_kernel(a_ref, p_ref, n_ref, o_ref, *, margin, inv_b, n_rows, n_cols, tm):
    i = pl.program_id(0)

    @pl.when(i == 0)
    def _init():
        o_ref[...] = jnp.zeros_like(o_ref)

    a = a_ref[...]
    p = p_ref[...]
    n = n_ref[...]
    # torch.pairwise_distance semantics: eps added to the difference on the real
    # D feature columns (zero-padded columns contribute nothing), p=2 norm, f32.
    col = jax.lax.broadcasted_iota(jnp.int32, a.shape, 1)
    eps = jnp.where(col < n_cols, jnp.float32(EPS), jnp.float32(0.0))
    dpos = a - p + eps
    dneg = a - n + eps
    d_ap = jnp.sqrt(jnp.sum(dpos * dpos, axis=-1, keepdims=True))  # (tm, 1)
    d_an = jnp.sqrt(jnp.sum(dneg * dneg, axis=-1, keepdims=True))  # (tm, 1)
    hinge = jnp.maximum(d_ap - d_an + margin, 0.0)                 # (tm, 1)
    row = i * tm + jax.lax.broadcasted_iota(jnp.int32, hinge.shape, 0)
    hinge = jnp.where(row < n_rows, hinge, 0.0)                    # drop padded rows
    o_ref[...] += jnp.sum(hinge, keepdims=True)                    # running sum

    @pl.when(i == pl.num_programs(0) - 1)
    def _finalize():
        o_ref[...] *= inv_b                                        # mean reduction


def triplet_margin_loss_padded(a, p, n, tile, n_rows, n_cols, margin):
    Bp, Dp = a.shape
    kernel = functools.partial(_loss_kernel, margin=float(margin),
                               inv_b=1.0 / float(n_rows),
                               n_rows=n_rows, n_cols=n_cols, tm=tile)
    out = pl.pallas_call(
        kernel,
        out_shape=jax.ShapeDtypeStruct((1, 1), jnp.float32),
        grid=(Bp // tile,),
        in_specs=[pl.BlockSpec((tile, Dp), lambda i: (i, 0))] * 3,
        out_specs=pl.BlockSpec((1, 1), lambda i: (0, 0)),
        compiler_params=pltpu.CompilerParams(
            dimension_semantics=("arbitrary",),
            vmem_limit_bytes=_VMEM_LIMIT),
    )(a, p, n)
    return out[0, 0]


# ----------------------------------------------------------------------------
# Forward: equivalent of TripletLoss.forward(x, y).
# ----------------------------------------------------------------------------
def triplet_loss_forward(x, y, margin=MARGIN, *, block_b=None):
    x = x.astype(jnp.float32)
    y = y.astype(jnp.int32)
    B, D = x.shape
    tile = _pick_tile(B, 256 if block_b is None else int(block_b))
    Bp = _round_up(B, tile)
    Dp = _round_up(D, 128)

    x_pad = jnp.zeros((Bp, Dp), jnp.float32).at[:B, :D].set(x)
    y_pad = jnp.full((Bp,), -1, jnp.int32).at[:B].set(y)   # padded rows match nothing

    pos_idx, neg_idx = batch_hard_mine(x_pad, y_pad, tile, B)

    # TODO(synk): fuse these two row gathers into the loss kernel (per-row DMA
    # gather from HBM driven by scalar-prefetched indices) to drop the extra
    # ~2*B*D HBM round-trip; kept as plain-JAX glue here.
    a = x_pad
    p = x_pad[pos_idx]
    n = x_pad[neg_idx]

    return triplet_margin_loss_padded(a, p, n, tile, B, D, margin)


if __name__ == "__main__":
    key = jax.random.PRNGKey(0)
    k1, k2 = jax.random.split(key)

    # Small single-tile case (original demo sizes).
    B1, D1 = 8, 32
    x1 = jax.random.normal(k1, (B1, D1), dtype=jnp.float32)
    y1 = jnp.array([0, 0, 1, 1, 2, 2, 3, 3], dtype=jnp.int32)
    loss1 = jax.jit(triplet_loss_forward)(x1, y1)
    jax.block_until_ready(loss1)

    # Still-small case that exercises the multi-tile / accumulator paths:
    # miner grid (2, 2), loss grid (2,), with batch and feature padding.
    B2, D2 = 200, 72
    x2 = jax.random.normal(k2, (B2, D2), dtype=jnp.float32)
    y2 = jnp.arange(B2, dtype=jnp.int32) % 8            # 8 classes, 25 each
    loss2 = jax.jit(functools.partial(triplet_loss_forward, block_b=128))(x2, y2)
    jax.block_until_ready(loss2)

    assert bool(jnp.isfinite(loss1)) and bool(jnp.isfinite(loss2))
    print("KERNEL_OK")
</pallas_src>

<mosaic_0001>
module attributes {stable_mosaic.version = 11 : i64} {
  func.func @_loss_kernel(%arg0: i32, %arg1: memref<8x128xf32, #tpu.memory_space<vmem>>, %arg2: memref<8x128xf32, #tpu.memory_space<vmem>>, %arg3: memref<8x128xf32, #tpu.memory_space<vmem>>, %arg4: memref<1x1xf32, #tpu.memory_space<vmem>>) attributes {dimension_semantics = [#tpu.dimension_semantics<arbitrary>], iteration_bounds = array<i64: 1>, scalar_prefetch = 0 : i64, scratch_operands = 0 : i64, tpu.core_type = #tpu.core_type<tc>, window_params = [{transform_indices = @transform_0, window_bounds = array<i64: 8, 128>}, {transform_indices = @transform_1, window_bounds = array<i64: 8, 128>}, {transform_indices = @transform_2, window_bounds = array<i64: 8, 128>}, {pipeline_mode = #tpu.pipeline_mode<synchronous>, transform_indices = @transform_3, window_bounds = array<i64: 1, 1>}]} {
    %c0_i32 = arith.constant 0 : i32
    %0 = arith.cmpi eq, %arg0, %c0_i32 : i32
    %1 = arith.extui %0 : i1 to i32
    %c0_i32_0 = arith.constant 0 : i32
    %2 = arith.cmpi ne, %1, %c0_i32_0 : i32
    scf.if %2 {
      %cst_20 = arith.constant 0.000000e+00 : f32
      %48 = vector.broadcast %cst_20 : f32 to vector<1x1xf32>
      %c0_21 = arith.constant 0 : index
      %c0_22 = arith.constant 0 : index
      %49 = vector.load %arg4[%c0_21, %c0_22] : memref<1x1xf32, #tpu.memory_space<vmem>>, vector<1x1xf32>
      tpu.vector_store %arg4[%c0_21, %c0_22], %48 {strides = array<i32>} : memref<1x1xf32, #tpu.memory_space<vmem>>, vector<1x1xf32>,
    } else {
    }
    %c0 = arith.constant 0 : index
    %c0_1 = arith.constant 0 : index
    %3 = vector.load %arg1[%c0, %c0_1] : memref<8x128xf32, #tpu.memory_space<vmem>>, vector<8x128xf32>
    %c0_2 = arith.constant 0 : index
    %c0_3 = arith.constant 0 : index
    %4 = vector.load %arg2[%c0_2, %c0_3] : memref<8x128xf32, #tpu.memory_space<vmem>>, vector<8x128xf32>
    %c0_4 = arith.constant 0 : index
    %c0_5 = arith.constant 0 : index
    %5 = vector.load %arg3[%c0_4, %c0_5] : memref<8x128xf32, #tpu.memory_space<vmem>>, vector<8x128xf32>
    %6 = tpu.iota {dimensions = array<i32: 1>} : vector<8x128xi32>
    %c32_i32 = arith.constant 32 : i32
    %7 = vector.broadcast %c32_i32 : i32 to vector<8x128xi32>
    %8 = arith.cmpi slt, %6, %7 : vector<8x128xi32>
    %cst = arith.constant 9.99999997E-7 : f32
    %cst_6 = arith.constant 0.000000e+00 : f32
    %9 = vector.broadcast %cst : f32 to vector<8x128xf32>
    %10 = vector.broadcast %cst_6 : f32 to vector<8x128xf32>
    %11 = arith.select %8, %9, %10 : vector<8x128xi1>, vector<8x128xf32>
    %12 = arith.subf %3, %4 : vector<8x128xf32>
    %13 = arith.addf %12, %11 : vector<8x128xf32>
    %14 = arith.subf %3, %5 : vector<8x128xf32>
    %15 = arith.addf %14, %11 : vector<8x128xf32>
    %16 = arith.mulf %13, %13 : vector<8x128xf32>
    %cst_7 = arith.constant dense<0.000000e+00> : vector<8xf32>
    %17 = vector.multi_reduction <add>, %16, %cst_7 [1] : vector<8x128xf32> to vector<8xf32>
    %18 = vector.shape_cast %17 : vector<8xf32> to vector<8x1xf32>
    %19 = math.sqrt %18 : vector<8x1xf32>
    %20 = arith.mulf %15, %15 : vector<8x128xf32>
    %cst_8 = arith.constant dense<0.000000e+00> : vector<8xf32>
    %21 = vector.multi_reduction <add>, %20, %cst_8 [1] : vector<8x128xf32> to vector<8xf32>
    %22 = vector.shape_cast %21 : vector<8xf32> to vector<8x1xf32>
    %23 = math.sqrt %22 : vector<8x1xf32>
    %24 = arith.subf %19, %23 : vector<8x1xf32>
    %cst_9 = arith.constant 1.000000e+00 : f32
    %25 = vector.broadcast %cst_9 : f32 to vector<8x1xf32>
    %26 = arith.addf %24, %25 : vector<8x1xf32>
    %cst_10 = arith.constant 0.000000e+00 : f32
    %27 = vector.broadcast %cst_10 : f32 to vector<8x1xf32>
    %28 = arith.maximumf %26, %27 : vector<8x1xf32>
    %c8_i32 = arith.constant 8 : i32
    %29 = arith.muli %arg0, %c8_i32 : i32
    %30 = tpu.iota {dimensions = array<i32: 0>} : vector<8x1xi32>
    %31 = vector.broadcast %29 : i32 to vector<8x1xi32>
    %32 = arith.addi %31, %30 : vector<8x1xi32>
    %c8_i32_11 = arith.constant 8 : i32
    %33 = vector.broadcast %c8_i32_11 : i32 to vector<8x1xi32>
    %34 = arith.cmpi slt, %32, %33 : vector<8x1xi32>
    %cst_12 = arith.constant 0.000000e+00 : f32
    %35 = vector.broadcast %cst_12 : f32 to vector<8x1xf32>
    %36 = arith.select %34, %28, %35 : vector<8x1xi1>, vector<8x1xf32>
    %c0_13 = arith.constant 0 : index
    %c0_14 = arith.constant 0 : index
    %37 = vector.load %arg4[%c0_13, %c0_14] : memref<1x1xf32, #tpu.memory_space<vmem>>, vector<1x1xf32>
    %38 = vector.shape_cast %36 : vector<8x1xf32> to vector<1x8x1xf32>
    %cst_15 = arith.constant dense<0.000000e+00> : vector<1xf32>
    %39 = vector.multi_reduction <add>, %38, %cst_15 [1, 2] : vector<1x8x1xf32> to vector<1xf32>
    %40 = vector.shape_cast %39 : vector<1xf32> to vector<1x1x1xf32>
    %41 = vector.extract %40[0, 0, 0] : f32 from vector<1x1x1xf32>
    %42 = vector.broadcast %41 : f32 to vector<1x1xf32>
    %43 = arith.addf %37, %42 : vector<1x1xf32>
    %c0_16 = arith.constant 0 : index
    %c0_17 = arith.constant 0 : index
    %44 = vector.load %arg4[%c0_16, %c0_17] : memref<1x1xf32, #tpu.memory_space<vmem>>, vector<1x1xf32>
    tpu.vector_store %arg4[%c0_16, %c0_17], %43 {strides = array<i32>} : memref<1x1xf32, #tpu.memory_space<vmem>>, vector<1x1xf32>,
    %c0_i32_18 = arith.constant 0 : i32
    %45 = arith.cmpi eq, %arg0, %c0_i32_18 : i32
    %46 = arith.extui %45 : i1 to i32
    %c0_i32_19 = arith.constant 0 : i32
    %47 = arith.cmpi ne, %46, %c0_i32_19 : i32
    scf.if %47 {
      %c0_20 = arith.constant 0 : index
      %c0_21 = arith.constant 0 : index
      %48 = vector.load %arg4[%c0_20, %c0_21] : memref<1x1xf32, #tpu.memory_space<vmem>>, vector<1x1xf32>
      %cst_22 = arith.constant 1.250000e-01 : f32
      %49 = vector.broadcast %cst_22 : f32 to vector<1x1xf32>
      %50 = arith.mulf %48, %49 : vector<1x1xf32>
      %c0_23 = arith.constant 0 : index
      %c0_24 = arith.constant 0 : index
      %51 = vector.load %arg4[%c0_23, %c0_24] : memref<1x1xf32, #tpu.memory_space<vmem>>, vector<1x1xf32>
      tpu.vector_store %arg4[%c0_23, %c0_24], %50 {strides = array<i32>} : memref<1x1xf32, #tpu.memory_space<vmem>>, vector<1x1xf32>,
    } else {
    }
    return
  }
  func.func @transform_0(%arg0: i32) -> (i32, i32) {
    %c0_i32 = arith.constant 0 : i32
    %c0_i32_0 = arith.constant 0 : i32
    return %arg0, %c0_i32 : i32, i32
  }
  func.func @transform_1(%arg0: i32) -> (i32, i32) {
    %c0_i32 = arith.constant 0 : i32
    %c0_i32_0 = arith.constant 0 : i32
    return %arg0, %c0_i32 : i32, i32
  }
  func.func @transform_2(%arg0: i32) -> (i32, i32) {
    %c0_i32 = arith.constant 0 : i32
    %c0_i32_0 = arith.constant 0 : i32
    return %arg0, %c0_i32 : i32, i32
  }
  func.func @transform_3(%arg0: i32) -> (i32, i32) {
    %c0_i32 = arith.constant 0 : i32
    %c0_i32_0 = arith.constant 0 : i32
    %c0_i32_1 = arith.constant 0 : i32
    return %c0_i32, %c0_i32_0 : i32, i32
  }
}

module attributes {stable_mosaic.version = 11 : i64} {
  func.func @_miner_kernel(%arg0: i32, %arg1: i32, %arg2: memref<8x128xbf16, #tpu.memory_space<vmem>>, %arg3: memref<8x128xbf16, #tpu.memory_space<vmem>>, %arg4: memref<8x1xf32, #tpu.memory_space<vmem>>, %arg5: memref<1x8xf32, #tpu.memory_space<vmem>>, %arg6: memref<8x1xi32, #tpu.memory_space<vmem>>, %arg7: memref<1x8xi32, #tpu.memory_space<vmem>>, %arg8: memref<8x1xi32, #tpu.memory_space<vmem>>, %arg9: memref<8x1xi32, #tpu.memory_space<vmem>>, %arg10: memref<8x1xf32, #tpu.memory_space<vmem>>, %arg11: memref<8x1xf32, #tpu.memory_space<vmem>>, %arg12: memref<8x1xf32, #tpu.memory_space<vmem>>, %arg13: memref<8x1xf32, #tpu.memory_space<vmem>>) attributes {dimension_semantics = [#tpu.dimension_semantics<parallel>, #tpu.dimension_semantics<arbitrary>], iteration_bounds = array<i64: 1, 1>, scalar_prefetch = 0 : i64, scratch_operands = 4 : i64, tpu.core_type = #tpu.core_type<tc>, window_params = [{transform_indices = @transform_0, window_bounds = array<i64: 8, 128>}, {transform_indices = @transform_1, window_bounds = array<i64: 8, 128>}, {transform_indices = @transform_2, window_bounds = array<i64: 8, 1>}, {transform_indices = @transform_3, window_bounds = array<i64: 1, 8>}, {transform_indices = @transform_4, window_bounds = array<i64: 8, 1>}, {transform_indices = @transform_5, window_bounds = array<i64: 1, 8>}, {transform_indices = @transform_6, window_bounds = array<i64: 8, 1>}, {transform_indices = @transform_7, window_bounds = array<i64: 8, 1>}]} {
    %c0_i32 = arith.constant 0 : i32
    %0 = arith.cmpi eq, %arg1, %c0_i32 : i32
    %1 = arith.extui %0 : i1 to i32
    %c0_i32_0 = arith.constant 0 : i32
    %2 = arith.cmpi ne, %1, %c0_i32_0 : i32
    scf.if %2 {
      %cst_47 = arith.constant -3.000000e+38 : f32
      %76 = vector.broadcast %cst_47 : f32 to vector<8x1xf32>
      %c0_48 = arith.constant 0 : index
      %c0_49 = arith.constant 0 : index
      %77 = vector.load %arg10[%c0_48, %c0_49] : memref<8x1xf32, #tpu.memory_space<vmem>>, vector<8x1xf32>
      tpu.vector_store %arg10[%c0_48, %c0_49], %76 {strides = array<i32>} : memref<8x1xf32, #tpu.memory_space<vmem>>, vector<8x1xf32>,
      %cst_50 = arith.constant 3.000000e+38 : f32
      %78 = vector.broadcast %cst_50 : f32 to vector<8x1xf32>
      %c0_51 = arith.constant 0 : index
      %c0_52 = arith.constant 0 : index
      %79 = vector.load %arg11[%c0_51, %c0_52] : memref<8x1xf32, #tpu.memory_space<vmem>>, vector<8x1xf32>
      tpu.vector_store %arg11[%c0_51, %c0_52], %78 {strides = array<i32>} : memref<8x1xf32, #tpu.memory_space<vmem>>, vector<8x1xf32>,
      %cst_53 = arith.constant 0.000000e+00 : f32
      %80 = vector.broadcast %cst_53 : f32 to vector<8x1xf32>
      %c0_54 = arith.constant 0 : index
      %c0_55 = arith.constant 0 : index
      %81 = vector.load %arg12[%c0_54, %c0_55] : memref<8x1xf32, #tpu.memory_space<vmem>>, vector<8x1xf32>
      tpu.vector_store %arg12[%c0_54, %c0_55], %80 {strides = array<i32>} : memref<8x1xf32, #tpu.memory_space<vmem>>, vector<8x1xf32>,
      %cst_56 = arith.constant 0.000000e+00 : f32
      %82 = vector.broadcast %cst_56 : f32 to vector<8x1xf32>
      %c0_57 = arith.constant 0 : index
      %c0_58 = arith.constant 0 : index
      %83 = vector.load %arg13[%c0_57, %c0_58] : memref<8x1xf32, #tpu.memory_space<vmem>>, vector<8x1xf32>
      tpu.vector_store %arg13[%c0_57, %c0_58], %82 {strides = array<i32>} : memref<8x1xf32, #tpu.memory_space<vmem>>, vector<8x1xf32>,
    } else {
    }
    %c0 = arith.constant 0 : index
    %c0_1 = arith.constant 0 : index
    %3 = vector.load %arg2[%c0, %c0_1] : memref<8x128xbf16, #tpu.memory_space<vmem>>, vector<8x128xbf16>
    %c0_2 = arith.constant 0 : index
    %c0_3 = arith.constant 0 : index
    %4 = vector.load %arg3[%c0_2, %c0_3] : memref<8x128xbf16, #tpu.memory_space<vmem>>, vector<8x128xbf16>
    %cst = arith.constant dense<0.000000e+00> : vector<8x8xf32>
    %5 = tpu.matmul %3, %4, %cst {dimension_numbers = #tpu.dot_dimension_numbers<[1], [1], [0], [0], [0, 0, 1, 0], [], []>} : vector<8x128xbf16>, vector<8x128xbf16>, vector<8x8xf32> -> vector<8x8xf32>
    %c0_4 = arith.constant 0 : index
    %c0_5 = arith.constant 0 : index
    %6 = vector.load %arg4[%c0_4, %c0_5] : memref<8x1xf32, #tpu.memory_space<vmem>>, vector<8x1xf32>
    %c0_6 = arith.constant 0 : index
    %c0_7 = arith.constant 0 : index
    %7 = vector.load %arg5[%c0_6, %c0_7] : memref<1x8xf32, #tpu.memory_space<vmem>>, vector<1x8xf32>
    %8 = vector.broadcast %6 : vector<8x1xf32> to vector<8x8xf32>
    %9 = vector.broadcast %7 : vector<1x8xf32> to vector<8x8xf32>
    %10 = arith.addf %8, %9 : vector<8x8xf32>
    %cst_8 = arith.constant 2.000000e+00 : f32
    %11 = vector.broadcast %cst_8 : f32 to vector<8x8xf32>
    %12 = arith.mulf %11, %5 : vector<8x8xf32>
    %13 = arith.subf %10, %12 : vector<8x8xf32>
    %cst_9 = arith.constant 0.000000e+00 : f32
    %14 = vector.broadcast %cst_9 : f32 to vector<8x8xf32>
    %15 = arith.maximumf %13, %14 : vector<8x8xf32>
    %c8_i32 = arith.constant 8 : i32
    %16 = arith.muli %arg0, %c8_i32 : i32
    %17 = tpu.iota {dimensions = array<i32: 0>} : vector<8x8xi32>
    %18 = vector.broadcast %16 : i32 to vector<8x8xi32>
    %19 = arith.addi %18, %17 : vector<8x8xi32>
    %c8_i32_10 = arith.constant 8 : i32
    %20 = arith.muli %arg1, %c8_i32_10 : i32
    %21 = tpu.iota {dimensions = array<i32: 1>} : vector<8x8xi32>
    %22 = vector.broadcast %20 : i32 to vector<8x8xi32>
    %23 = arith.addi %22, %21 : vector<8x8xi32>
    %c0_11 = arith.constant 0 : index
    %c0_12 = arith.constant 0 : index
    %24 = vector.load %arg6[%c0_11, %c0_12] : memref<8x1xi32, #tpu.memory_space<vmem>>, vector<8x1xi32>
    %c0_13 = arith.constant 0 : index
    %c0_14 = arith.constant 0 : index
    %25 = vector.load %arg7[%c0_13, %c0_14] : memref<1x8xi32, #tpu.memory_space<vmem>>, vector<1x8xi32>
    %26 = vector.broadcast %24 : vector<8x1xi32> to vector<8x8xi32>
    %27 = vector.broadcast %25 : vector<1x8xi32> to vector<8x8xi32>
    %28 = arith.cmpi eq, %26, %27 : vector<8x8xi32>
    %c8_i32_15 = arith.constant 8 : i32
    %29 = vector.broadcast %c8_i32_15 : i32 to vector<8x8xi32>
    %30 = arith.cmpi slt, %23, %29 : vector<8x8xi32>
    %31 = arith.cmpi ne, %19, %23 : vector<8x8xi32>
    %32 = arith.andi %28, %31 : vector<8x8xi1>
    %33 = arith.andi %32, %30 : vector<8x8xi1>
    %cst_16 = arith.constant dense<true> : vector<8x8xi1>
    %34 = arith.xori %28, %cst_16 : vector<8x8xi1>
    %35 = arith.andi %34, %30 : vector<8x8xi1>
    %36 = arith.sitofp %23 : vector<8x8xi32> to vector<8x8xf32>
    %cst_17 = arith.constant -3.000000e+38 : f32
    %37 = vector.broadcast %cst_17 : f32 to vector<8x8xf32>
    %38 = arith.select %33, %15, %37 : vector<8x8xi1>, vector<8x8xf32>
    %cst_18 = arith.constant dense<0xFF800000> : vector<8xf32>
    %39 = vector.multi_reduction <maximumf>, %38, %cst_18 [1] : vector<8x8xf32> to vector<8xf32>
    %40 = vector.shape_cast %39 : vector<8xf32> to vector<8x1xf32>
    %41 = vector.broadcast %40 : vector<8x1xf32> to vector<8x8xf32>
    %42 = arith.cmpf oeq, %38, %41 : vector<8x8xf32>
    %cst_19 = arith.constant 3.000000e+38 : f32
    %43 = vector.broadcast %cst_19 : f32 to vector<8x8xf32>
    %44 = arith.select %42, %36, %43 : vector<8x8xi1>, vector<8x8xf32>
    %cst_20 = arith.constant dense<0x7F800000> : vector<8xf32>
    %45 = vector.multi_reduction <minimumf>, %44, %cst_20 [1] : vector<8x8xf32> to vector<8xf32>
    %46 = vector.shape_cast %45 : vector<8xf32> to vector<8x1xf32>
    %c0_21 = arith.constant 0 : index
    %c0_22 = arith.constant 0 : index
    %47 = vector.load %arg10[%c0_21, %c0_22] : memref<8x1xf32, #tpu.memory_space<vmem>>, vector<8x1xf32>
    %48 = arith.cmpf ogt, %40, %47 : vector<8x1xf32>
    %c0_23 = arith.constant 0 : index
    %c0_24 = arith.constant 0 : index
    %49 = vector.load %arg12[%c0_23, %c0_24] : memref<8x1xf32, #tpu.memory_space<vmem>>, vector<8x1xf32>
    %50 = arith.select %48, %46, %49 : vector<8x1xi1>, vector<8x1xf32>
    %c0_25 = arith.constant 0 : index
    %c0_26 = arith.constant 0 : index
    %51 = vector.load %arg12[%c0_25, %c0_26] : memref<8x1xf32, #tpu.memory_space<vmem>>, vector<8x1xf32>
    tpu.vector_store %arg12[%c0_25, %c0_26], %50 {strides = array<i32>} : memref<8x1xf32, #tpu.memory_space<vmem>>, vector<8x1xf32>,
    %c0_27 = arith.constant 0 : index
    %c0_28 = arith.constant 0 : index
    %52 = vector.load %arg10[%c0_27, %c0_28] : memref<8x1xf32, #tpu.memory_space<vmem>>, vector<8x1xf32>
    %53 = arith.select %48, %40, %52 : vector<8x1xi1>, vector<8x1xf32>
    %c0_29 = arith.constant 0 : index
    %c0_30 = arith.constant 0 : index
    %54 = vector.load %arg10[%c0_29, %c0_30] : memref<8x1xf32, #tpu.memory_space<vmem>>, vector<8x1xf32>
    tpu.vector_store %arg10[%c0_29, %c0_30], %53 {strides = array<i32>} : memref<8x1xf32, #tpu.memory_space<vmem>>, vector<8x1xf32>,
    %cst_31 = arith.constant 3.000000e+38 : f32
    %55 = vector.broadcast %cst_31 : f32 to vector<8x8xf32>
    %56 = arith.select %35, %15, %55 : vector<8x8xi1>, vector<8x8xf32>
    %cst_32 = arith.constant dense<0x7F800000> : vector<8xf32>
    %57 = vector.multi_reduction <minimumf>, %56, %cst_32 [1] : vector<8x8xf32> to vector<8xf32>
    %58 = vector.shape_cast %57 : vector<8xf32> to vector<8x1xf32>
    %59 = vector.broadcast %58 : vector<8x1xf32> to vector<8x8xf32>
    %60 = arith.cmpf oeq, %56, %59 : vector<8x8xf32>
    %cst_33 = arith.constant 3.000000e+38 : f32
    %61 = vector.broadcast %cst_33 : f32 to vector<8x8xf32>
    %62 = arith.select %60, %36, %61 : vector<8x8xi1>, vector<8x8xf32>
    %cst_34 = arith.constant dense<0x7F800000> : vector<8xf32>
    %63 = vector.multi_reduction <minimumf>, %62, %cst_34 [1] : vector<8x8xf32> to vector<8xf32>
    %64 = vector.shape_cast %63 : vector<8xf32> to vector<8x1xf32>
    %c0_35 = arith.constant 0 : index
    %c0_36 = arith.constant 0 : index
    %65 = vector.load %arg11[%c0_35, %c0_36] : memref<8x1xf32, #tpu.memory_space<vmem>>, vector<8x1xf32>
    %66 = arith.cmpf olt, %58, %65 : vector<8x1xf32>
    %c0_37 = arith.constant 0 : index
    %c0_38 = arith.constant 0 : index
    %67 = vector.load %arg13[%c0_37, %c0_38] : memref<8x1xf32, #tpu.memory_space<vmem>>, vector<8x1xf32>
    %68 = arith.select %66, %64, %67 : vector<8x1xi1>, vector<8x1xf32>
    %c0_39 = arith.constant 0 : index
    %c0_40 = arith.constant 0 : index
    %69 = vector.load %arg13[%c0_39, %c0_40] : memref<8x1xf32, #tpu.memory_space<vmem>>, vector<8x1xf32>
    tpu.vector_store %arg13[%c0_39, %c0_40], %68 {strides = array<i32>} : memref<8x1xf32, #tpu.memory_space<vmem>>, vector<8x1xf32>,
    %c0_41 = arith.constant 0 : index
    %c0_42 = arith.constant 0 : index
    %70 = vector.load %arg11[%c0_41, %c0_42] : memref<8x1xf32, #tpu.memory_space<vmem>>, vector<8x1xf32>
    %71 = arith.select %66, %58, %70 : vector<8x1xi1>, vector<8x1xf32>
    %c0_43 = arith.constant 0 : index
    %c0_44 = arith.constant 0 : index
    %72 = vector.load %arg11[%c0_43, %c0_44] : memref<8x1xf32, #tpu.memory_space<vmem>>, vector<8x1xf32>
    tpu.vector_store %arg11[%c0_43, %c0_44], %71 {strides = array<i32>} : memref<8x1xf32, #tpu.memory_space<vmem>>, vector<8x1xf32>,
    %c0_i32_45 = arith.constant 0 : i32
    %73 = arith.cmpi eq, %arg1, %c0_i32_45 : i32
    %74 = arith.extui %73 : i1 to i32
    %c0_i32_46 = arith.constant 0 : i32
    %75 = arith.cmpi ne, %74, %c0_i32_46 : i32
    scf.if %75 {
      %c0_47 = arith.constant 0 : index
      %c0_48 = arith.constant 0 : index
      %76 = vector.load %arg12[%c0_47, %c0_48] : memref<8x1xf32, #tpu.memory_space<vmem>>, vector<8x1xf32>
      %77 = arith.fptosi %76 : vector<8x1xf32> to vector<8x1xi32>
      %c0_49 = arith.constant 0 : index
      %c0_50 = arith.constant 0 : index
      %78 = vector.load %arg8[%c0_49, %c0_50] : memref<8x1xi32, #tpu.memory_space<vmem>>, vector<8x1xi32>
      tpu.vector_store %arg8[%c0_49, %c0_50], %77 {strides = array<i32>} : memref<8x1xi32, #tpu.memory_space<vmem>>, vector<8x1xi32>,
      %c0_51 = arith.constant 0 : index
      %c0_52 = arith.constant 0 : index
      %79 = vector.load %arg13[%c0_51, %c0_52] : memref<8x1xf32, #tpu.memory_space<vmem>>, vector<8x1xf32>
      %80 = arith.fptosi %79 : vector<8x1xf32> to vector<8x1xi32>
      %c0_53 = arith.constant 0 : index
      %c0_54 = arith.constant 0 : index
      %81 = vector.load %arg9[%c0_53, %c0_54] : memref<8x1xi32, #tpu.memory_space<vmem>>, vector<8x1xi32>
      tpu.vector_store %arg9[%c0_53, %c0_54], %80 {strides = array<i32>} : memref<8x1xi32, #tpu.memory_space<vmem>>, vector<8x1xi32>,
    } else {
    }
    return
  }
  func.func @transform_0(%arg0: i32, %arg1: i32) -> (i32, i32) {
    %c0_i32 = arith.constant 0 : i32
    %c0_i32_0 = arith.constant 0 : i32
    return %arg0, %c0_i32 : i32, i32
  }
  func.func @transform_1(%arg0: i32, %arg1: i32) -> (i32, i32) {
    %c0_i32 = arith.constant 0 : i32
    %c0_i32_0 = arith.constant 0 : i32
    return %arg1, %c0_i32 : i32, i32
  }
  func.func @transform_2(%arg0: i32, %arg1: i32) -> (i32, i32) {
    %c0_i32 = arith.constant 0 : i32
    %c0_i32_0 = arith.constant 0 : i32
    return %arg0, %c0_i32 : i32, i32
  }
  func.func @transform_3(%arg0: i32, %arg1: i32) -> (i32, i32) {
    %c0_i32 = arith.constant 0 : i32
    %c0_i32_0 = arith.constant 0 : i32
    return %c0_i32, %arg1 : i32, i32
  }
  func.func @transform_4(%arg0: i32, %arg1: i32) -> (i32, i32) {
    %c0_i32 = arith.constant 0 : i32
    %c0_i32_0 = arith.constant 0 : i32
    return %arg0, %c0_i32 : i32, i32
  }
  func.func @transform_5(%arg0: i32, %arg1: i32) -> (i32, i32) {
    %c0_i32 = arith.constant 0 : i32
    %c0_i32_0 = arith.constant 0 : i32
    return %c0_i32, %arg1 : i32, i32
  }
  func.func @transform_6(%arg0: i32, %arg1: i32) -> (i32, i32) {
    %c0_i32 = arith.constant 0 : i32
    %c0_i32_0 = arith.constant 0 : i32
    return %arg0, %c0_i32 : i32, i32
  }
  func.func @transform_7(%arg0: i32, %arg1: i32) -> (i32, i32) {
    %c0_i32 = arith.constant 0 : i32
    %c0_i32_0 = arith.constant 0 : i32
    return %arg0, %c0_i32 : i32, i32
  }
}

</mosaic_0001>

<bundles_post_ra>
// kernel: triplet_loss_forward.2
= control target key start
LH: loop header
LB: loop body
LE: loop exit
PB: predicated region body
PF: predicated region fallthrough
CT: control target
= control target key end

     0   :  { %vm30_vm0 = vcmask 7168   ;;  %v195_v0 = vmov 0.0   ;;  %vm196_vm1 = vmmov 0   ;;  %v197_v3 = vmov 0   ;;  %s281_s1 = inlined_call_operand.vmem [shape: bf16[8,128], index: 1, kind: input, shape index: {}, may-alias: {0,1}]   ;;  %s282_s2 = inlined_call_operand.vmem [shape: f32[8,1], index: 2, kind: input, shape index: {}]   ;;  %s283_s4 = inlined_call_operand.vmem [shape: s32[8,1], index: 4, kind: input, shape index: {}]   ;;  %s284_s0 = inlined_call_operand.vmem [shape: bf16[8,128], index: 0, kind: input, shape index: {}, may-alias: {0,1}]   ;;  %s285_s3 = inlined_call_operand.vmem [shape: f32[1,8], index: 3, kind: input, shape index: {}]   ;;  %s286_s5 = inlined_call_operand.vmem [shape: s32[1,8], index: 5, kind: input, shape index: {}]   ;;  %s287_s6 = inlined_call_operand.vmem [shape: s32[8,1], index: 6, kind: output, shape index: {0}]   ;;  %s288_s7 = inlined_call_operand.vmem [shape: s32[8,1], index: 7, kind: output, shape index: {1}]  }
   0x1   :  { %33 = vst.msk [vmem:[#allocation4] sm:$0xff] %vm30_vm0, %v195_v0  ;;  %34 = vst.msk [vmem:[#allocation5] sm:$0xff] %vm30_vm0, %v195_v0  ;;  %178 = vmatprep.subr.bf16.mxu0 %v195_v0  ;;  %v36_v1 = vld [vmem:[%s281_s1] sm:$0xf]  ;;  %180 = vmatprep.mubr.msk.bf16.mxu0 %vm196_vm1, %v195_v0  ;;  %v198_v6 = vmov -3e+38   ;;  %v95_v8 = vlaneseq }
   0x2   :  { %v77_v2 = vld [vmem:[%s282_s2] sm:$0xff]  ;;  %179 = vmatpush3.bf16.xpose.msra.mxu0 %v36_v1  ;;  %194 = vset.pattern.permute.xlu0 %v197_v3  ;;  %31 = vst.msk [vmem:[#allocation2] sm:$0xff] %vm30_vm0, %v198_v6  ;;  %vm199_vm6 = vmmov 1   ;;  %vm122_vm8 = vcmask 64512   ;;  %v200_v26 = vmov 3e+38  }
   0x3   :  { %81 = vperm.xlu0 %194, %v77_v2   ;;  %v104_v4 = vld [vmem:[%s283_s4] sm:$0xff]  ;;  %v96_v10 = vshrl.u32 %v95_v8, 7  ;;  %v101_v11 = vand.u32 127, %v95_v8  ;;  %32 = vst.msk [vmem:[#allocation3] sm:$0xff] %vm30_vm0, %v200_v26 }
   0x4   :  { %v35_v5 = vld [vmem:[%s284_s0] sm:$0xf] }
   0x5   :  { %v174_v9 = vld [vmem:[%s285_s3] ss:$0 sm:$0xff]  ;;  %vm115_vm2 = vcmp.ne.s32.totalorder %v96_v10, %v101_v11  ;;  %vm114_vm5 = vcmp.lt.s32.totalorder %v101_v11, 8  ;;  %v120_v28 = vcvt.s32.f32 %v101_v11 }
   0x6   :  { %v175_v12 = vld [vmem:[%s286_s5] ss:$0 sm:$0xff] }
   0x7   :  { %107 = vperm.xlu0 %194, %v104_v4  }
   0x8   :  { %v133_v38 = vld [vmem:[#allocation4] sm:$0xff]  ;;  %v151_v41 = vld [vmem:[#allocation5] sm:$0xff] }
   0x9   :  { %181 = vmatmul.mubr.bf16.vlgmr.msra.gmra.mxu0 %v35_v5  ;;  %v131_v27 = vld [vmem:[#allocation2] sm:$0xff] }
   0xa   :  { %v149_v32 = vld [vmem:[#allocation3] sm:$0xff] }
  0x7e   :  { %v82_v7 = vpop.permute.xlu0 %81 }
  0x7f   :  { %v90_v14 = vadd.f32 %v174_v9, %v82_v7 }
  0x82   :  { %v108_v13 = vpop.permute.xlu0 %107 }
  0x83   :  { %vm113_vm3 = vcmp.eq.s32.totalorder %v108_v13, %v175_v12 }
  0x84   :  { %vm116_vm4 = vmand %vm113_vm3, %vm115_vm2 }
  0x85   :  { %vm118_vm7 = vmxor %vm113_vm3, %vm199_vm6 }
  0x86   :  { %vm117_vm9 = vmand %vm116_vm4, %vm114_vm5 }
  0x87   :  { %vm119_vm10 = vmand %vm118_vm7, %vm114_vm5 }
  0xc9   :  { %v71_v15 = vpop.f32.mrf.mxu0 }
  0xca   :  { %v91_v16 = vmul.f32 2.0, %v71_v15 }
  0xcb   :  { %v182_v17 = vpop.f32.mrf.mxu0 }
  0xcc   :  { %v92_v18 = vsub.f32 %v90_v14, %v91_v16 }
  0xcd   :  { %v74_v19 = vpop.f32.mrf.mxu0 }
  0xce   :  { %v93_v20 = vmax.f32 %v92_v18, 0.0 }
  0xcf   :  { %v183_v21 = vpop.f32.mrf.mxu0 }
  0xd0   :  { %v121_v22 = vsel %vm117_vm9, %v93_v20, -3e+38  ;;  %v140_v24 = vsel %vm119_vm10, %v93_v20, 3e+38 }
  0xd1   :  { %v123_v23 = vsel %vm122_vm8, %v121_v22, -inf  ;;  %v141_v25 = vsel %vm122_vm8, %v140_v24, inf }
  0xd2   :  { %124 = vmax.xlane.f32.xlu1 %v123_v23 }
  0xd6   :  { %142 = vmin.xlane.f32.xlu1 %v141_v25 }
 0x15b   :  { %v125_v29 = vpop.xlane.xlu1 %124 }
 0x15c   :  { %vm132_vm11 = vcmp.gt.f32.partialorder %v125_v29, %v131_v27  ;;  %vm126_vm12 = vcmp.eq.f32.partialorder %v121_v22, %v125_v29 }
 0x15d   :  { %v138_v30 = vsel %vm132_vm11, %v125_v29, %v131_v27  ;;  %v127_v31 = vsel %vm126_vm12, %v120_v28, 3e+38 }
 0x15e   :  { %139 = vst.msk [vmem:[#allocation2] sm:$0xff] %vm30_vm0, %v138_v30  ;;  %v128_v33 = vsel %vm122_vm8, %v127_v31, inf }
 0x15f   :  { %129 = vmin.xlane.f32.xlu0 %v128_v33  ;;  %v143_v34 = vpop.xlane.xlu1 %142 }
 0x160   :  { %vm150_vm13 = vcmp.lt.f32.partialorder %v143_v34, %v149_v32  ;;  %vm144_vm14 = vcmp.eq.f32.partialorder %v140_v24, %v143_v34 }
 0x161   :  { %v155_v35 = vsel %vm150_vm13, %v143_v34, %v149_v32  ;;  %v145_v36 = vsel %vm144_vm14, %v120_v28, 3e+38 }
 0x162   :  { %156 = vst.msk [vmem:[#allocation3] sm:$0xff] %vm30_vm0, %v155_v35  ;;  %v146_v37 = vsel %vm122_vm8, %v145_v36, inf }
 0x163   :  { %147 = vmin.xlane.f32.xlu1 %v146_v37 }
 0x1e8   :  { %v130_v39 = vpop.xlane.xlu0 %129 }
 0x1e9   :  { %v134_v40 = vsel %vm132_vm11, %v130_v39, %v133_v38 }
 0x1ea   :  { %136 = vst.msk [vmem:[#allocation4] sm:$0xff] %vm30_vm0, %v134_v40 }
 0x1ec   :  { %v148_v42 = vpop.xlane.xlu1 %147 }
 0x1ed   :  { %v152_v43 = vsel %vm150_vm13, %v148_v42, %v151_v41 }
 0x1ee   :  { %153 = vst.msk [vmem:[#allocation5] sm:$0xff] %vm30_vm0, %v152_v43 }
 0x1f1   :  { %v160_v44 = vld [vmem:[#allocation4] sm:$0xff] }
 0x1f2   :  { %v184_v45 = vtrunc.f32 %v160_v44 }
 0x1f4   :  { %v185_v46 = vcvt.f32.s32 %v184_v45 }
 0x1f5   :  { %v163_v47 = vld [vmem:[#allocation5] sm:$0xff] }
 0x1f6   :  { %162 = vst.msk [vmem:[%s287_s6] sm:$0xff] %vm30_vm0, %v185_v46  ;;  %v186_v48 = vtrunc.f32 %v163_v47 }
 0x1f8   :  { %v187_v49 = vcvt.f32.s32 %v186_v48 }
 0x1fa   :  { %165 = vst.msk [vmem:[%s288_s7] sm:$0xff] %vm30_vm0, %v187_v49 }

// kernel: triplet_loss_forward.3
= control target key start
LH: loop header
LB: loop body
LE: loop exit
PB: predicated region body
PF: predicated region fallthrough
CT: control target
= control target key end

     0   :  { %v24_v2 = vlaneseq  ;;  %vm19_vm0 = vcmask 0   ;;  %v128_v4 = vmov 0.0   ;;  %s165_s0 = inlined_call_operand.vmem [shape: f32[8,128], index: 0, kind: input, shape index: {}]   ;;  %s166_s1 = inlined_call_operand.vmem [shape: f32[8,128], index: 1, kind: input, shape index: {}]   ;;  %s167_s2 = inlined_call_operand.vmem [shape: f32[8,128], index: 2, kind: input, shape index: {}]   ;;  %s168_s3 = inlined_call_operand.hbm [shape: f32[1,1], index: 3, kind: output, shape index: {}]  }
   0x1   :  { %v21_v0 = vld [vmem:[%s165_s0] sm:$0xff]  ;;  %20 = vst.msk [vmem:[#allocation2] sm:$0x1] %vm19_vm0, %v128_v4 }
   0x2   :  { %v22_v1 = vld [vmem:[%s166_s1] sm:$0xff] }
   0x3   :  { %v23_v3 = vld [vmem:[%s167_s2] sm:$0xff] }
   0x4   :  { %8 = vsyncpa [#allocation3], 0  ;;  %v25_v5 = vand.u32 127, %v24_v2  ;;  %v28_v6 = vsub.f32 %v21_v0, %v22_v1  ;;  %v30_v7 = vsub.f32 %v21_v0, %v23_v3  ;;  %vm63_vm6 = vcmask 7168   ;;  %s129_s1 = smov [#allocation2]  }
   0x5   :  { %s90_s2 = sshll.u32 %s129_s1, 4  ;;  %s91_s2 = int_to_ptr.vmem [resolvable:$true] %s90_s2 }
   0x6   :  { %vm26_vm1 = vcmp.lt.s32.totalorder %v25_v5, 32  ;;  %s106_s18 = scalar_lea.vmem %s91_s2, 16  ;;  %s110_s19 = scalar_lea.vmem %s91_s2, 32 }
   0x7   :  { %v27_v8 = vsel %vm26_vm1, 1e-06, %v128_v4  ;;  %p107_p0 = scmp.ne.s32.totalorder %s91_s2, %s106_s18  ;;  %p111_p1 = scmp.lt.s32.totalorder %s91_s2, %s91_s2 }
   0x8   :  { %v29_v9 = vadd.f32 %v28_v6, %v27_v8  ;;  %v31_v10 = vadd.f32 %v30_v7, %v27_v8  ;;  %v62_v36 = vld [vmem:[#allocation2] sm:$0x1]  ;;  %p112_p2 = scmp.lt.s32.totalorder %s110_s19, %s106_s18 }
   0xa   :  { %v32_v11 = vmul.f32 %v29_v9, %v29_v9  ;;  %v42_v12 = vmul.f32 %v31_v10, %v31_v10  ;;  %p113_p3 = por %p112_p2, %p111_p1 }
   0xc   :  { %33 = vadd.xlane.f32.xlu0 %v32_v11  ;;  %p114_p4 = pnand %p113_p3, %p107_p0 }
  0x10   :  { %43 = vadd.xlane.f32.xlu0 %v42_v12 }
  0x95   :  { %v34_v13 = vpop.xlane.xlu0 %33 }
  0x96   :  { %102 = vrsqrt.f32 %v34_v13  ;;  %vm37_vm2 = vcmp.eq.f32.partialorder %v34_v13, inf  ;;  %v40_v20 = vand.u32 2147483648, %v34_v13  ;;  %vm39_vm4 = vcmp.eq.f32.partialorder %v34_v13, 0.0 }
  0x99   :  { %v44_v14 = vpop.xlane.xlu0 %43 }
  0x9a   :  { %104 = vrsqrt.f32 %v44_v14  ;;  %vm47_vm3 = vcmp.eq.f32.partialorder %v44_v14, inf  ;;  %v50_v21 = vand.u32 2147483648, %v44_v14  ;;  %vm49_vm5 = vcmp.eq.f32.partialorder %v44_v14, 0.0 }
  0xa3   :  { %v103_v15 = vpop.eup %102 }
  0xa4   :  { %v36_v16 = vmul.f32 %v103_v15, %v34_v13 }
  0xa6   :  { %v38_v19 = vsel %vm37_vm2, %v34_v13, %v36_v16 }
  0xa7   :  { %v105_v17 = vpop.eup %104  ;;  %v41_v23 = vsel %vm39_vm4, %v40_v20, %v38_v19 }
  0xa8   :  { %v46_v18 = vmul.f32 %v105_v17, %v44_v14 }
  0xaa   :  { %v48_v22 = vsel %vm47_vm3, %v44_v14, %v46_v18 }
  0xab   :  { %v51_v24 = vsel %vm49_vm5, %v50_v21, %v48_v22 }
  0xac   :  { %v52_v25 = vsub.f32 %v41_v23, %v51_v24 }
  0xae   :  { %v53_v26 = vadd.f32 1.0, %v52_v25 }
  0xb0   :  { %v54_v27 = vmax.f32 %v53_v26, 0.0 }
  0xb2   :  { %v64_v28 = vsel %vm63_vm6, %v54_v27, 0.0 }
  0xb3   :  { %65 = vadd.xlane.f32.xlu1 %v64_v28 }
 0x13c   :  { %v66_v29 = vpop.xlane.xlu1 %65 }
 0x13d   :  { %v67_v30 = vrot.slane %v66_v29, 4 }
 0x13f   :  { %v68_v31 = vadd.f32 %v67_v30, %v66_v29 }
 0x141   :  { %v69_v32 = vrot.slane %v68_v31, 2 }
 0x143   :  { %v70_v33 = vadd.f32 %v69_v32, %v68_v31 }
 0x145   :  { %v71_v34 = vrot.slane %v70_v33, 1 }
 0x147   :  { %v72_v35 = vadd.f32 %v71_v34, %v70_v33 }
 0x149   :  { %98 = vpush %v72_v35 }
 0x17a   :  { %s99_s0 = spop %98 }
 0x17b   :  { %v74_v37 = vstv %s99_s0 }
 0x17c   :  { %v75_v38 = vadd.f32 %v74_v37, %v62_v36 }
 0x17e   :  { %77 = vst.msk [vmem:[#allocation2] sm:$0x1] %vm19_vm0, %v75_v38 }
 0x185   :  { %v81_v39 = vld [vmem:[#allocation2] sm:$0x1] }
 0x186   :  { %v82_v40 = vmul.f32 0.125, %v81_v39 }
 0x188   :  { %83 = vst.msk [vmem:[#allocation2] sm:$0x1] %vm19_vm0, %v82_v40 }
 0x189   :  { %117 = shalt.err (!%p114_p4)
}
 0x18a   :  { %93 = dma.vmem_to_hbm [thread:$0]  %s91_s2, 16, %s168_s3, [#allocation3]  }
 0x18b   :  { %126 = dma.done.wait [#allocation3], 16  }
 0x18c   :  { %127 = vsyncadd [#allocation3], 4294967280 }
 0x18d   :  { %97 = vsyncpa [#allocation3], 1 }

</bundles_post_ra>
